<compile_context>
chip_gen: v7x
topology: tpu7x:2x2x1
jax: 0.10.0
libtpu: 0.0.40
codegen_flags: <defaults>
</compile_context>

<pallas_src>
import functools

import jax
import jax.numpy as jnp
from jax.experimental import pallas as pl
from jax.experimental.pallas import tpu as pltpu


def _myloss_kernel(pol_ref, x_ref, s_ref, out_ref, acc_ref, *,
                   n_total, tiles_per_group, blk):
    # pol_ref: (NB, 1) int32 | x_ref: (NB, D) | s_ref: (3, D) f32 (resident)
    # out_ref: (1, 1) f32 partial sum for this group | acc_ref: (1, 1) f32 scratch
    g = pl.program_id(0)
    k = pl.program_id(1)

    @pl.when(k == 0)
    def _init():
        acc_ref[...] = jnp.zeros_like(acc_ref)

    x = x_ref[...].astype(jnp.float32)                     # (NB, D)
    p = pol_ref[...]                                       # (NB, 1) int32
    s = s_ref[...]                                         # (3, D) float32

    # Exact per-row prototype gather as a 3-way VPU select (no MXU).
    s_sel = jnp.where(p == 0, s[0:1, :],
                      jnp.where(p == 1, s[1:2, :], s[2:3, :]))   # (NB, D)

    diff = x - s_sel
    row_sq = jnp.sum(diff * diff, axis=1, keepdims=True)   # (NB, 1)

    # Row-granularity mask: padded rows of a partial last tile and clamped
    # duplicate tiles (when G*K > num_tiles) contribute exactly zero.
    tile = g * tiles_per_group + k
    row_idx = jax.lax.broadcasted_iota(jnp.int32, row_sq.shape, 0) + tile * blk
    row_sq = jnp.where(row_idx < n_total, row_sq, 0.0)

    acc_ref[...] += jnp.sum(row_sq, axis=0, keepdims=True)

    @pl.when(k == pl.num_programs(1) - 1)
    def _finalize():
        out_ref[...] = acc_ref[...]


def _vmem_budget():
    """Generation-aware VMEM sizing: (streamed-tile byte budget, vmem_limit_bytes)."""
    try:
        cap = int(pltpu.get_tpu_info().vmem_capacity_bytes)
    except Exception:
        cap = 64 * 1024 * 1024                 # conservative fallback (v7x-sized)
    limit = max(32 * 1024 * 1024, min(cap * 3 // 4, 96 * 1024 * 1024))
    return limit // 2, limit                   # half the limit for input tiles


def myloss(inputs, polarity, standar_score, *, attention_dim, batch_size,
           block_rows=None):
    """Pallas Myloss forward. Returns a scalar float32 loss."""
    inputs = jnp.asarray(inputs)                                   # native dtype
    standar_score = jnp.asarray(standar_score, dtype=jnp.float32)  # keep f32
    polarity = jnp.asarray(polarity, dtype=jnp.int32)

    n, d = inputs.shape
    n_cls = standar_score.shape[0]
    assert n_cls == 3, "Myloss assumes 3 polarity classes"
    pol = polarity.reshape(n, 1)

    itemsize = jnp.dtype(inputs.dtype).itemsize
    budget, vmem_limit = _vmem_budget()
    # Per-row VMEM cost: double-buffered x tile + double-buffered polarity
    # column (lane-padded to 128) + ~3 full-width f32 temporaries.
    row_bytes = 2 * (d * itemsize + 128 * 4) + 3 * d * 4
    if block_rows is not None:
        rows = max(8, (int(block_rows) // 8) * 8)
    else:
        rows = max(8, (budget // row_bytes) // 8 * 8)
    blk = n if n <= rows else rows
    num_tiles = pl.cdiv(n, blk)

    n_groups = 2 if num_tiles >= 2 else 1          # feed both v7x TensorCores
    tiles_per_group = pl.cdiv(num_tiles, n_groups)

    def tile_index(g, k):
        t = g * tiles_per_group + k
        if n_groups * tiles_per_group > num_tiles:
            t = jnp.minimum(t, num_tiles - 1)      # keep DMA windows in bounds
        return t

    kernel = functools.partial(_myloss_kernel, n_total=n,
                               tiles_per_group=tiles_per_group, blk=blk)

    flops = 6 * n * d
    bytes_accessed = n * d * itemsize + n * 4 + n_cls * d * 4 + n_groups * 4

    partials = pl.pallas_call(
        kernel,
        out_shape=jax.ShapeDtypeStruct((n_groups, 1), jnp.float32),
        grid=(n_groups, tiles_per_group),
        in_specs=[
            pl.BlockSpec((blk, 1), lambda g, k: (tile_index(g, k), 0)),   # labels
            pl.BlockSpec((blk, d), lambda g, k: (tile_index(g, k), 0)),   # inputs
            pl.BlockSpec((n_cls, d), lambda g, k: (0, 0)),                # prototypes
        ],
        out_specs=pl.BlockSpec((1, 1), lambda g, k: (g, 0)),              # per-group partial
        scratch_shapes=[pltpu.VMEM((1, 1), jnp.float32)],                 # running sum
        compiler_params=pltpu.CompilerParams(
            dimension_semantics=("parallel", "arbitrary"),
            vmem_limit_bytes=vmem_limit,
        ),
        cost_estimate=pl.CostEstimate(
            flops=flops, transcendentals=0, bytes_accessed=bytes_accessed),
    )(pol, inputs, standar_score)

    loss_min = jnp.sum(partials) / (2.0 * float(attention_dim) * float(batch_size))

    # Tiny (3, D) cosine penalty in pure JAX, original operator precedence:
    # (a.b / ||a||) * ||b||
    s = standar_score

    def cos_(a, b):
        return (jnp.sum(a * b, axis=-1)
                / jnp.sqrt(jnp.sum(a * a, axis=-1))
                * jnp.sqrt(jnp.sum(b * b, axis=-1)))

    c01 = cos_(s[0], s[1])
    c02 = cos_(s[0], s[2])
    c12 = cos_(s[1], s[2])
    return loss_min + 15.0 * (c01 * c01 + c02 * c02 + c12 * c12)


def _reference(inputs, polarity, standar_score, attention_dim, batch_size):
    """Pure-JAX reference mirroring the PyTorch forward exactly."""
    x = jnp.asarray(inputs, jnp.float32)
    s = jnp.asarray(standar_score, jnp.float32)
    n_cls = s.shape[0]
    ext = jnp.repeat(x[:, None, :], n_cls, axis=1)                 # (N, P, D)
    loss_all = ext - s[None, :, :]
    loss_all_sqr = jnp.einsum('npd,nqd->npq', loss_all, loss_all)  # (N, P, P)
    diag = jnp.diagonal(loss_all_sqr, axis1=-2, axis2=-1)          # (N, P)
    mask = jax.nn.one_hot(polarity, n_cls, dtype=jnp.float32)
    loss_min = jnp.sum(jnp.sum(diag * mask, axis=-1), axis=-1) / (
        2 * attention_dim * batch_size)

    def cos_(a, b):
        return (jnp.sum(a * b, axis=-1)
                / jnp.sqrt(jnp.sum(a * a, axis=-1))
                * jnp.sqrt(jnp.sum(b * b, axis=-1)))

    c01 = cos_(s[0], s[1])
    c02 = cos_(s[0], s[2])
    c12 = cos_(s[1], s[2])
    return loss_min + 15.0 * (c01 * c01 + c02 * c02 + c12 * c12)


if __name__ == "__main__":
    key = jax.random.PRNGKey(0)
    k_x, k_p, k_s = jax.random.split(key, 3)

    # Shapes implied by the module: seq (batch) = 8, hidden = 2*attention_dim = 32.
    N, D, P = 8, 32, 3
    attention_dim, batch_size = D // 2, N

    inputs = jax.random.normal(k_x, (N, D), dtype=jnp.float32)
    polarity = jax.random.randint(k_p, (N,), 0, P, dtype=jnp.int32)
    standar_score = jax.random.normal(k_s, (P, D), dtype=jnp.float32)

    out = myloss(inputs, polarity, standar_score,
                 attention_dim=attention_dim, batch_size=batch_size)
    out = jax.block_until_ready(out)
    ref = _reference(inputs, polarity, standar_score, attention_dim, batch_size)
    assert out.shape == ()
    assert jnp.allclose(out, ref, rtol=1e-4, atol=1e-4), (out, ref)

    # Also exercise the multi-tile / two-group / masked-partial-tile path.
    N2 = 40
    k_x2, k_p2 = jax.random.split(k_x)
    inputs2 = jax.random.normal(k_x2, (N2, D), dtype=jnp.float32)
    polarity2 = jax.random.randint(k_p2, (N2,), 0, P, dtype=jnp.int32)
    out2 = myloss(inputs2, polarity2, standar_score,
                  attention_dim=attention_dim, batch_size=N2, block_rows=16)
    out2 = jax.block_until_ready(out2)
    ref2 = _reference(inputs2, polarity2, standar_score, attention_dim, N2)
    assert jnp.allclose(out2, ref2, rtol=1e-4, atol=1e-4), (out2, ref2)

    print("KERNEL_OK")
</pallas_src>

<mosaic_0001>
module attributes {stable_mosaic.version = 11 : i64} {
  func.func @_myloss_kernel(%arg0: i32, %arg1: i32, %arg2: memref<8x1xi32, #tpu.memory_space<vmem>>, %arg3: memref<8x32xf32, #tpu.memory_space<vmem>>, %arg4: memref<3x32xf32, #tpu.memory_space<vmem>>, %arg5: memref<1x1xf32, #tpu.memory_space<vmem>>, %arg6: memref<1x1xf32, #tpu.memory_space<vmem>>) attributes {dimension_semantics = [#tpu.dimension_semantics<parallel>, #tpu.dimension_semantics<arbitrary>], iteration_bounds = array<i64: 1, 1>, scalar_prefetch = 0 : i64, scratch_operands = 1 : i64, tpu.core_type = #tpu.core_type<tc>, window_params = [{transform_indices = @transform_0, window_bounds = array<i64: 8, 1>}, {transform_indices = @transform_1, window_bounds = array<i64: 8, 32>}, {pipeline_mode = #tpu.pipeline_mode<synchronous>, transform_indices = @transform_2, window_bounds = array<i64: 3, 32>}, {transform_indices = @transform_3, window_bounds = array<i64: 1, 1>}]} {
    %c0_i32 = arith.constant 0 : i32
    %0 = arith.cmpi eq, %arg1, %c0_i32 : i32
    %1 = arith.extui %0 : i1 to i32
    %c0_i32_0 = arith.constant 0 : i32
    %2 = arith.cmpi ne, %1, %c0_i32_0 : i32
    scf.if %2 {
      %cst_17 = arith.constant 0.000000e+00 : f32
      %47 = vector.broadcast %cst_17 : f32 to vector<1x1xf32>
      %c0_18 = arith.constant 0 : index
      %c0_19 = arith.constant 0 : index
      %48 = vector.load %arg6[%c0_18, %c0_19] : memref<1x1xf32, #tpu.memory_space<vmem>>, vector<1x1xf32>
      tpu.vector_store %arg6[%c0_18, %c0_19], %47 {strides = array<i32>} : memref<1x1xf32, #tpu.memory_space<vmem>>, vector<1x1xf32>,
    } else {
    }
    %c0 = arith.constant 0 : index
    %c0_1 = arith.constant 0 : index
    %3 = vector.load %arg3[%c0, %c0_1] : memref<8x32xf32, #tpu.memory_space<vmem>>, vector<8x32xf32>
    %c0_2 = arith.constant 0 : index
    %c0_3 = arith.constant 0 : index
    %4 = vector.load %arg2[%c0_2, %c0_3] : memref<8x1xi32, #tpu.memory_space<vmem>>, vector<8x1xi32>
    %c0_4 = arith.constant 0 : index
    %c0_5 = arith.constant 0 : index
    %5 = vector.load %arg4[%c0_4, %c0_5] : memref<3x32xf32, #tpu.memory_space<vmem>>, vector<3x32xf32>
    %c0_i32_6 = arith.constant 0 : i32
    %6 = vector.broadcast %c0_i32_6 : i32 to vector<8x1xi32>
    %7 = arith.cmpi eq, %4, %6 : vector<8x1xi32>
    %8 = vector.extract_strided_slice %5 {offsets = [0, 0], sizes = [1, 32], strides = [1, 1]} : vector<3x32xf32> to vector<1x32xf32>
    %c1_i32 = arith.constant 1 : i32
    %9 = vector.broadcast %c1_i32 : i32 to vector<8x1xi32>
    %10 = arith.cmpi eq, %4, %9 : vector<8x1xi32>
    %11 = vector.extract_strided_slice %5 {offsets = [1, 0], sizes = [1, 32], strides = [1, 1]} : vector<3x32xf32> to vector<1x32xf32>
    %12 = vector.extract_strided_slice %5 {offsets = [2, 0], sizes = [1, 32], strides = [1, 1]} : vector<3x32xf32> to vector<1x32xf32>
    %13 = vector.shape_cast %10 : vector<8x1xi1> to vector<8x1xi1>
    %14 = vector.broadcast %13 : vector<8x1xi1> to vector<8x32xi1>
    %15 = vector.shape_cast %11 : vector<1x32xf32> to vector<1x32xf32>
    %16 = vector.broadcast %15 : vector<1x32xf32> to vector<8x32xf32>
    %17 = vector.shape_cast %12 : vector<1x32xf32> to vector<1x32xf32>
    %18 = vector.broadcast %17 : vector<1x32xf32> to vector<8x32xf32>
    %19 = arith.select %14, %16, %18 : vector<8x32xi1>, vector<8x32xf32>
    %20 = vector.shape_cast %7 : vector<8x1xi1> to vector<8x1xi1>
    %21 = vector.broadcast %20 : vector<8x1xi1> to vector<8x32xi1>
    %22 = vector.shape_cast %8 : vector<1x32xf32> to vector<1x32xf32>
    %23 = vector.broadcast %22 : vector<1x32xf32> to vector<8x32xf32>
    %24 = arith.select %21, %23, %19 : vector<8x32xi1>, vector<8x32xf32>
    %25 = arith.subf %3, %24 : vector<8x32xf32>
    %26 = arith.mulf %25, %25 : vector<8x32xf32>
    %cst = arith.constant dense<0.000000e+00> : vector<8xf32>
    %27 = vector.multi_reduction <add>, %26, %cst [1] : vector<8x32xf32> to vector<8xf32>
    %28 = vector.shape_cast %27 : vector<8xf32> to vector<8x1xf32>
    %c1_i32_7 = arith.constant 1 : i32
    %29 = arith.muli %arg0, %c1_i32_7 : i32
    %30 = arith.addi %29, %arg1 : i32
    %31 = tpu.iota {dimensions = array<i32: 0>} : vector<8x1xi32>
    %c8_i32 = arith.constant 8 : i32
    %32 = arith.muli %30, %c8_i32 : i32
    %33 = vector.broadcast %32 : i32 to vector<8x1xi32>
    %34 = arith.addi %31, %33 : vector<8x1xi32>
    %c8_i32_8 = arith.constant 8 : i32
    %35 = vector.broadcast %c8_i32_8 : i32 to vector<8x1xi32>
    %36 = arith.cmpi slt, %34, %35 : vector<8x1xi32>
    %cst_9 = arith.constant 0.000000e+00 : f32
    %37 = vector.broadcast %cst_9 : f32 to vector<8x1xf32>
    %38 = arith.select %36, %28, %37 : vector<8x1xi1>, vector<8x1xf32>
    %c0_10 = arith.constant 0 : index
    %c0_11 = arith.constant 0 : index
    %39 = vector.load %arg6[%c0_10, %c0_11] : memref<1x1xf32, #tpu.memory_space<vmem>>, vector<1x1xf32>
    %cst_12 = arith.constant dense<0.000000e+00> : vector<1xf32>
    %40 = vector.multi_reduction <add>, %38, %cst_12 [0] : vector<8x1xf32> to vector<1xf32>
    %41 = vector.shape_cast %40 : vector<1xf32> to vector<1x1xf32>
    %42 = arith.addf %39, %41 : vector<1x1xf32>
    %c0_13 = arith.constant 0 : index
    %c0_14 = arith.constant 0 : index
    %43 = vector.load %arg6[%c0_13, %c0_14] : memref<1x1xf32, #tpu.memory_space<vmem>>, vector<1x1xf32>
    tpu.vector_store %arg6[%c0_13, %c0_14], %42 {strides = array<i32>} : memref<1x1xf32, #tpu.memory_space<vmem>>, vector<1x1xf32>,
    %c0_i32_15 = arith.constant 0 : i32
    %44 = arith.cmpi eq, %arg1, %c0_i32_15 : i32
    %45 = arith.extui %44 : i1 to i32
    %c0_i32_16 = arith.constant 0 : i32
    %46 = arith.cmpi ne, %45, %c0_i32_16 : i32
    scf.if %46 {
      %c0_17 = arith.constant 0 : index
      %c0_18 = arith.constant 0 : index
      %47 = vector.load %arg6[%c0_17, %c0_18] : memref<1x1xf32, #tpu.memory_space<vmem>>, vector<1x1xf32>
      %c0_19 = arith.constant 0 : index
      %c0_20 = arith.constant 0 : index
      %48 = vector.load %arg5[%c0_19, %c0_20] : memref<1x1xf32, #tpu.memory_space<vmem>>, vector<1x1xf32>
      tpu.vector_store %arg5[%c0_19, %c0_20], %47 {strides = array<i32>} : memref<1x1xf32, #tpu.memory_space<vmem>>, vector<1x1xf32>,
    } else {
    }
    return
  }
  func.func @transform_0(%arg0: i32, %arg1: i32) -> (i32, i32) {
    %c1_i32 = arith.constant 1 : i32
    %0 = arith.muli %arg0, %c1_i32 : i32
    %1 = arith.addi %0, %arg1 : i32
    %c0_i32 = arith.constant 0 : i32
    %c0_i32_0 = arith.constant 0 : i32
    return %1, %c0_i32 : i32, i32
  }
  func.func @transform_1(%arg0: i32, %arg1: i32) -> (i32, i32) {
    %c1_i32 = arith.constant 1 : i32
    %0 = arith.muli %arg0, %c1_i32 : i32
    %1 = arith.addi %0, %arg1 : i32
    %c0_i32 = arith.constant 0 : i32
    %c0_i32_0 = arith.constant 0 : i32
    return %1, %c0_i32 : i32, i32
  }
  func.func @transform_2(%arg0: i32, %arg1: i32) -> (i32, i32) {
    %c0_i32 = arith.constant 0 : i32
    %c0_i32_0 = arith.constant 0 : i32
    %c0_i32_1 = arith.constant 0 : i32
    return %c0_i32, %c0_i32_0 : i32, i32
  }
  func.func @transform_3(%arg0: i32, %arg1: i32) -> (i32, i32) {
    %c0_i32 = arith.constant 0 : i32
    %c0_i32_0 = arith.constant 0 : i32
    return %arg0, %c0_i32 : i32, i32
  }
}

</mosaic_0001>

<bundles_post_ra>
// kernel: tpu_custom_call.1
= control target key start
LH: loop header
LB: loop body
LE: loop exit
PB: predicated region body
PF: predicated region fallthrough
CT: control target
= control target key end

     0   :  { %s214_s0 = inlined_call_operand.vmem [shape: s32[8,1], index: 0, kind: input, shape index: {}]   ;;  %s215_s1 = inlined_call_operand.vmem [shape: f32[8,32], index: 1, kind: input, shape index: {}]   ;;  %s216_s2 = inlined_call_operand.vmem [shape: f32[3,32], index: 2, kind: input, shape index: {}]   ;;  %s217_s3 = inlined_call_operand.hbm [shape: f32[1,1], index: 3, kind: output, shape index: {}]  }
   0x1   :  { %v56_v0 = vld [vmem:[%s214_s0] sm:$0xff] }
   0x2   :  { %8 = vsyncpa [#allocation4], 0  ;;  %v167_v1 = vmov 0   ;;  %vm59_vm0 = vcmp.eq.s32.totalorder %v56_v0, 1  ;;  %vm58_vm1 = vcmp.eq.s32.totalorder %v56_v0, 0  ;;  %v65_v4 = vlaneseq  ;;  %v55_v15 = vld [vmem:[%s215_s1] sm:$0xff] }
   0x3   :  { %142 = vset.pattern.permute.xlu0 %v167_v1  ;;  %v60_v2 = vsel %vm59_vm0, 1, %v167_v1  ;;  %v74_v3 = vsel %vm58_vm1, 1, %v167_v1  ;;  %v57_v8 = vld [vmem:[%s216_s2] sm:$0x7]  ;;  %vm86_vm4 = vcmask 261120   ;;  %vm53_vm5 = vcmask 0  }
   0x4   :  { %62 = vperm.xlu0 %142, %v60_v2   ;;  %v66_v5 = vshrl.u32 %v65_v4, 7  ;;  %v168_v21 = vmov 0.0   ;;  %s169_s1 = smov [#allocation3]  }
   0x5   :  { %54 = vst.msk [vmem:[#allocation2] sm:$0x1] %vm53_vm5, %v168_v21  ;;  %s119_s2 = sshll.u32 %s169_s1, 4  ;;  %s120_s2 = int_to_ptr.vmem [resolvable:$true] %s119_s2 }
   0x6   :  { %v67_v6 = vsub.s32 1, %v66_v5  ;;  %v71_v7 = vsub.s32 2, %v66_v5  ;;  %v81_v9 = vsub.s32 0, %v66_v5  ;;  %s143_s17 = scalar_lea.vmem %s120_s2, 16  ;;  %s147_s18 = scalar_lea.vmem %s120_s2, 32 }
   0x7   :  { %p144_p0 = scmp.ne.s32.totalorder %s120_s2, %s143_s17  ;;  %p148_p1 = scmp.lt.s32.totalorder %s120_s2, %s120_s2 }
   0x8   :  { %76 = vperm.xlu0 %142, %v74_v3   ;;  %v68_v11 = vrot.slane %v57_v8, %v67_v6  ;;  %v72_v12 = vrot.slane %v57_v8, %v71_v7  ;;  %v82_v13 = vrot.slane %v57_v8, %v81_v9  ;;  %p149_p2 = scmp.lt.s32.totalorder %s147_s18, %s143_s17 }
   0xa   :  { %p150_p3 = por %p149_p2, %p148_p1 }
   0xc   :  { %v98_v28 = vld [vmem:[#allocation2] sm:$0x1]  ;;  %p151_p4 = pnand %p150_p3, %p144_p0 }
  0x83   :  { %v63_v10 = vpop.permute.xlu0 %62 }
  0x84   :  { %vm64_vm2 = vcmp.eq.s32.totalorder %v63_v10, 1 }
  0x85   :  { %v73_v16 = vsel %vm64_vm2, %v68_v11, %v72_v12 }
  0x87   :  { %v77_v14 = vpop.permute.xlu0 %76 }
  0x88   :  { %vm78_vm3 = vcmp.eq.s32.totalorder %v77_v14, 1 }
  0x89   :  { %v83_v17 = vsel %vm78_vm3, %v82_v13, %v73_v16 }
  0x8a   :  { %v84_v18 = vsub.f32 %v55_v15, %v83_v17 }
  0x8c   :  { %v85_v19 = vmul.f32 %v84_v18, %v84_v18 }
  0x8e   :  { %v87_v20 = vsel %vm86_vm4, %v85_v19, 0.0 }
  0x8f   :  { %88 = vadd.xlane.f32.xlu1 %v87_v20 }
 0x11c   :  { %v89_v22 = vpop.xlane.xlu1 %88 }
 0x11d   :  { %v99_v23 = vrot.slane %v89_v22, 4 }
 0x11f   :  { %v100_v24 = vadd.f32 %v99_v23, %v89_v22 }
 0x121   :  { %v101_v25 = vrot.slane %v100_v24, 2 }
 0x123   :  { %v102_v26 = vadd.f32 %v101_v25, %v100_v24 }
 0x125   :  { %v103_v27 = vrot.slane %v102_v26, 1 }
 0x127   :  { %v104_v29 = vadd.f32 %v103_v27, %v102_v26 }
 0x129   :  { %v105_v30 = vadd.f32 %v104_v29, %v98_v28 }
 0x12b   :  { %107 = vst.msk [vmem:[#allocation2] sm:$0x1] %vm53_vm5, %v105_v30 }
 0x132   :  { %v111_v31 = vld [vmem:[#allocation2] sm:$0x1] }
 0x133   :  { %112 = vst.msk [vmem:[#allocation3] sm:$0x1] %vm53_vm5, %v111_v31 }
 0x134   :  { %154 = shalt.err (!%p151_p4)
}
 0x135   :  { %s155_s21 = scalar_lea.hbm %s217_s3, 16 }
 0x136   :  { %p156_p5 = scmp.ne.s32.totalorder %s217_s3, %s155_s21  ;;  %p159_p6 = scmp.lt.u32.totalorder %s155_s21, %s217_s3 }
 0x138   :  { %p161_p7 = pnand %p159_p6, %p156_p5 }
 0x13a   :  { %164 = shalt.err (!%p161_p7)
}
 0x13b   :  { %122 = dma.vmem_to_hbm [thread:$0]  %s120_s2, 16, %s217_s3, [#allocation4]  }
 0x13c   :  { %165 = dma.done.wait [#allocation4], 16  }
 0x13d   :  { %166 = vsyncadd [#allocation4], 4294967280 }
 0x13e   :  { %126 = vsyncpa [#allocation4], 1 }

</bundles_post_ra>
